<compile_context>
chip_gen: v6e
topology: v6e:2x2x1
jax: 0.10.0
libtpu: 0.0.40
codegen_flags: <defaults>
</compile_context>

<pallas_src>
import functools

import jax
import jax.numpy as jnp
from jax.experimental import pallas as pl
from jax.experimental.pallas import tpu as pltpu


# --------------------------- compiler configuration --------------------------

def _vmem_limit_bytes():
    """Raised scoped-VMEM limit with headroom below physical capacity."""
    try:
        cap = pltpu.get_tpu_info().vmem_capacity_bytes  # 64 MiB v7x, 128 MiB v5e/v6e
    except Exception:
        cap = 64 * 1024 * 1024                          # conservative fallback
    return int(min(100 * 1024 * 1024, int(cap * 0.85)))


_VMEM_LIMIT = _vmem_limit_bytes()


def _cparams(dimension_semantics):
    return pltpu.CompilerParams(dimension_semantics=dimension_semantics,
                                vmem_limit_bytes=_VMEM_LIMIT)


def _const_spec(shape, single_buffer):
    """BlockSpec for a grid-constant weight (index_map is all zeros)."""
    idx = lambda *_: (0,) * len(shape)
    if single_buffer:
        # Never changes across the grid -> a second pipeline buffer is pure waste.
        return pl.BlockSpec(shape, idx, pipeline_mode=pl.Buffered(1))
    return pl.BlockSpec(shape, idx)


# --------------------------- in-kernel helpers --------------------------------

def _ln_rows(x, g, b, eps=1e-5):
    """Row-wise LayerNorm in f32. x:[R,D], g/b:[1,D]."""
    mean = jnp.mean(x, axis=-1, keepdims=True)
    var = jnp.mean(jnp.square(x - mean), axis=-1, keepdims=True)
    return (x - mean) * jax.lax.rsqrt(var + eps) * g + b


# ----------------------------- Pallas kernels ---------------------------------

def _embed_kernel(patch_ref, w_ref, cls_ref, pos_ref, g_ref, be_ref, o_ref):
    """Patch-embed matmul + CLS token (LAST row) + pos-emb + pre-LN (one image)."""
    n_patch = patch_ref.shape[0]
    x = jnp.dot(patch_ref[...].astype(jnp.bfloat16), w_ref[...],
                preferred_element_type=jnp.float32)                  # (n_patch, D)
    g = g_ref[...].astype(jnp.float32)
    be = be_ref[...].astype(jnp.float32)
    # CLS sits at row S-1 so both this store and the projector load are aligned.
    o_ref[0:n_patch, :] = _ln_rows(
        x + pos_ref[0:n_patch, :].astype(jnp.float32), g, be).astype(o_ref.dtype)
    o_ref[n_patch:, :] = _ln_rows(
        cls_ref[...].astype(jnp.float32) + pos_ref[n_patch:, :].astype(jnp.float32),
        g, be).astype(o_ref.dtype)


def _layers_kernel(h0_ref, ln1g_ref, ln1b_ref, wqkv_ref, bqkv_ref,
                   wo_ref, bo_ref, ln2g_ref, ln2b_ref,
                   w1_ref, b1_ref, w2_ref, b2_ref, o_ref,
                   h_scr, q_scr, k_scr, v_scr, attn_scr,
                   *, heads, dh, scale):
    """One (batch, layer) grid step of the fused CLIP encoder stack."""
    l = pl.program_id(1)
    d = heads * dh

    @pl.when(l == 0)
    def _():                                    # new image: load the residual stream
        h_scr[...] = h0_ref[...].astype(jnp.float32)

    x = h_scr[...]                              # (S, D) f32 residual stream

    # ---- attention: LN1 + fused QKV + head-batched SDPA + single out-proj ----
    hn = _ln_rows(x, ln1g_ref[...].astype(jnp.float32),
                  ln1b_ref[...].astype(jnp.float32))
    qkv = jnp.dot(hn.astype(jnp.bfloat16), wqkv_ref[...],
                  preferred_element_type=jnp.float32) + bqkv_ref[...]   # (S, 3D)

    # Stage Q/K/V head-leading (flash-attention layout) as bf16 MXU operands.
    for h in range(heads):
        lo = h * dh
        q_scr[h] = (qkv[:, lo:lo + dh] * scale).astype(jnp.bfloat16)
        k_scr[h] = qkv[:, d + lo:d + lo + dh].astype(jnp.bfloat16)
        v_scr[h] = qkv[:, 2 * d + lo:2 * d + lo + dh].astype(jnp.bfloat16)

    s = jnp.einsum("hqd,hkd->hqk", q_scr[...], k_scr[...],
                   preferred_element_type=jnp.float32)                  # (H, S, S)
    s = s - jnp.max(s, axis=-1, keepdims=True)
    p = jnp.exp(s)
    p = p * pl.reciprocal(jnp.sum(p, axis=-1, keepdims=True), approx=True)
    oh = jnp.einsum("hqk,hkd->hqd", p.astype(jnp.bfloat16), v_scr[...],
                    preferred_element_type=jnp.float32)                 # (H, S, dh)

    # Assemble heads at their lane offsets, then ONE full-depth out-projection.
    for h in range(heads):
        attn_scr[:, h * dh:(h + 1) * dh] = oh[h]
    attn = jnp.dot(attn_scr[...].astype(jnp.bfloat16), wo_ref[...],
                   preferred_element_type=jnp.float32) + bo_ref[...]
    h1 = x + attn                                                       # residual

    # ---- MLP: LN2 + Linear + quick_gelu + Linear + residual ----
    hn2 = _ln_rows(h1, ln2g_ref[...].astype(jnp.float32),
                   ln2b_ref[...].astype(jnp.float32))
    m = jnp.dot(hn2.astype(jnp.bfloat16), w1_ref[...],
                preferred_element_type=jnp.float32) + b1_ref[...]
    m = m * jax.nn.sigmoid(1.702 * m)                                   # CLIP quick_gelu
    h2 = h1 + jnp.dot(m.astype(jnp.bfloat16), w2_ref[...],
                      preferred_element_type=jnp.float32) + b2_ref[...]

    h_scr[...] = h2                                                     # carry to l+1

    @pl.when(l == pl.num_programs(1) - 1)
    def _():
        o_ref[...] = h2.astype(o_ref.dtype)


def _proj_kernel(h_ref, w1_ref, b1_ref, w2_ref, b2_ref, o_ref, y_scr):
    """Drop CLS (last row) + mm_projector Linear -> GELU -> Linear, column-tiled."""
    n_patch = o_ref.shape[0]

    @pl.when(pl.program_id(1) == 0)
    def _():                                  # GELU intermediate computed once/image
        f = h_ref[0:n_patch, :]               # tile-aligned: CLS is the LAST row
        y = jnp.dot(f, w1_ref[...], preferred_element_type=jnp.float32) + b1_ref[...]
        y_scr[...] = jax.nn.gelu(y, approximate=False)      # nn.GELU default (erf)

    z = jnp.dot(y_scr[...].astype(jnp.bfloat16), w2_ref[...],
                preferred_element_type=jnp.float32) + b2_ref[...]
    o_ref[...] = z.astype(o_ref.dtype)


# ------------------------------ kernel wrappers --------------------------------

def embed_preln(patches, params, S, D, *, single_buffer_weights):
    B, n_patch, CPP = patches.shape
    pos = params["pos_emb"]
    pos_cls_last = jnp.concatenate([pos[1:], pos[0:1]], axis=0)   # CLS row moved last
    cs = functools.partial(_const_spec, single_buffer=single_buffer_weights)
    return pl.pallas_call(
        _embed_kernel,
        out_shape=jax.ShapeDtypeStruct((B, S, D), jnp.bfloat16),
        grid=(B,),
        in_specs=[
            pl.BlockSpec((None, n_patch, CPP), lambda b: (b, 0, 0)),
            cs((CPP, D)),        # patch-embed weight (bf16)
            cs((1, D)),          # cls embedding
            cs((S, D)),          # position embedding (CLS row last)
            cs((1, D)),          # pre-LN gamma
            cs((1, D)),          # pre-LN beta
        ],
        out_specs=pl.BlockSpec((None, S, D), lambda b: (b, 0, 0)),
        compiler_params=_cparams(("parallel",)),
    )(patches,
      params["patch_w"].astype(jnp.bfloat16),
      params["cls_emb"].reshape(1, D),
      pos_cls_last,
      params["pre_ln_g"].reshape(1, D),
      params["pre_ln_b"].reshape(1, D))


def transformer_layers(h, params, heads):
    """All used encoder layers fused into one pallas_call, grid = (batch, layer)."""
    B, S, D = h.shape
    layers = params["layers"][:-1]   # hidden_states[-2] => last layer never runs
    L = len(layers)
    M = layers[0]["w1"].shape[1]
    dh = D // heads

    def stack(name, dtype, tail):
        return (jnp.stack([lyr[name] for lyr in layers])
                .astype(dtype).reshape((L,) + tail))

    # bf16 weights (halved DMA/VMEM), f32 LN params & biases (elementwise math)
    wqkv = stack("wqkv", jnp.bfloat16, (D, 3 * D))
    wo = stack("wo", jnp.bfloat16, (D, D))
    w1 = stack("w1", jnp.bfloat16, (D, M))
    w2 = stack("w2", jnp.bfloat16, (M, D))
    ln1g = stack("ln1_g", jnp.float32, (1, D))
    ln1b = stack("ln1_b", jnp.float32, (1, D))
    ln2g = stack("ln2_g", jnp.float32, (1, D))
    ln2b = stack("ln2_b", jnp.float32, (1, D))
    bqkv = stack("bqkv", jnp.float32, (1, 3 * D))
    bo = stack("bo", jnp.float32, (1, D))
    b1 = stack("b1", jnp.float32, (1, M))
    b2 = stack("b2", jnp.float32, (1, D))

    def lspec(shape):   # per-layer stacked parameter: default double-buffering so
        return pl.BlockSpec((None,) + shape,            # layer l+1 prefetches under l
                            lambda b, l, _s=shape: (l,) + (0,) * len(_s))

    kernel = functools.partial(_layers_kernel, heads=heads, dh=dh,
                               scale=1.0 / (dh ** 0.5))

    flops = B * L * (2 * S * D * 3 * D          # fused QKV projection
                     + 4 * heads * S * S * dh   # scores + PV
                     + 2 * S * D * D            # out-projection
                     + 4 * S * D * M)           # MLP up + down
    transc = B * L * (heads * S * S + S * M)    # softmax exp + quick_gelu sigmoid
    bytes_acc = (2 * L * (D * 3 * D + D * D + 2 * D * M)   # bf16 weights
                 + B * 2 * 2 * S * D                        # bf16 activation in/out
                 + 4 * L * (6 * D + 3 * D + M + D))         # f32 LN / bias vectors

    return pl.pallas_call(
        kernel,
        out_shape=jax.ShapeDtypeStruct((B, S, D), jnp.bfloat16),
        grid=(B, L),
        in_specs=[pl.BlockSpec((None, S, D), lambda b, l: (b, 0, 0)),
                  lspec((1, D)), lspec((1, D)),           # ln1 gamma / beta
                  lspec((D, 3 * D)), lspec((1, 3 * D)),   # fused QKV
                  lspec((D, D)), lspec((1, D)),           # out-projection
                  lspec((1, D)), lspec((1, D)),           # ln2 gamma / beta
                  lspec((D, M)), lspec((1, M)),           # MLP up
                  lspec((M, D)), lspec((1, D))],          # MLP down
        out_specs=pl.BlockSpec((None, S, D), lambda b, l: (b, 0, 0)),
        scratch_shapes=[
            pltpu.VMEM((S, D), jnp.float32),              # residual stream (carried)
            pltpu.VMEM((heads, S, dh), jnp.bfloat16),     # Q (head-leading)
            pltpu.VMEM((heads, S, dh), jnp.bfloat16),     # K
            pltpu.VMEM((heads, S, dh), jnp.bfloat16),     # V
            pltpu.VMEM((S, D), jnp.float32),              # attention-head assembly
        ],
        compiler_params=_cparams(("parallel", "arbitrary")),
        cost_estimate=pl.CostEstimate(flops=flops, transcendentals=transc,
                                      bytes_accessed=bytes_acc),
    )(h, ln1g, ln1b, wqkv, bqkv, wo, bo, ln2g, ln2b, w1, b1, w2, b2)


def mm_projector(h, params, n_patch, llm_dim, *, single_buffer_weights, out_dtype):
    B, S, D = h.shape
    col_bs = llm_dim if llm_dim <= 512 else 512   # lane-dense output column tile
    assert llm_dim % col_bs == 0
    ncol = llm_dim // col_bs
    cs = functools.partial(_const_spec, single_buffer=single_buffer_weights)

    flops = B * (2 * n_patch * D * llm_dim + 2 * n_patch * llm_dim * llm_dim)
    transc = B * n_patch * llm_dim
    bytes_acc = (2 * (D * llm_dim + llm_dim * llm_dim)
                 + B * (2 * S * D + 4 * n_patch * llm_dim))

    return pl.pallas_call(
        _proj_kernel,
        out_shape=jax.ShapeDtypeStruct((B, n_patch, llm_dim), out_dtype),
        grid=(B, ncol),
        in_specs=[pl.BlockSpec((None, S, D), lambda b, j: (b, 0, 0)),
                  cs((D, llm_dim)),                                   # proj W1 (bf16)
                  cs((1, llm_dim)),                                   # proj b1
                  pl.BlockSpec((llm_dim, col_bs), lambda b, j: (0, j)),   # W2 col tile
                  pl.BlockSpec((1, col_bs), lambda b, j: (0, j))],        # b2 col tile
        out_specs=pl.BlockSpec((None, n_patch, col_bs), lambda b, j: (b, 0, j)),
        scratch_shapes=[pltpu.VMEM((n_patch, llm_dim), jnp.float32)],  # GELU interm.
        compiler_params=_cparams(("parallel", "arbitrary")),
        cost_estimate=pl.CostEstimate(flops=flops, transcendentals=transc,
                                      bytes_accessed=bytes_acc),
    )(h,
      params["proj_w1"].astype(jnp.bfloat16),
      params["proj_b1"].reshape(1, llm_dim),
      params["proj_w2"].astype(jnp.bfloat16),
      params["proj_b2"].reshape(1, llm_dim))


# ------------------------- parameters (synthetic) ------------------------------
# TODO(synk): real LLaVA/CLIP checkpoint weights cannot be loaded in-script;
# deterministic synthetic parameters with the same structure are used instead.

def init_params(key):
    # small CLIP-like config; 3 layers so the fused (B, L) grid is exercised
    # (hidden_states[-2] selection means only the first 2 actually run)
    C, P, D, heads, n_layers, mlp_dim, llm_dim = 3, 8, 32, 4, 3, 64, 64
    H = W = 16
    n_patch = (H // P) * (W // P)
    S = n_patch + 1

    def nrm(k, shape, scale=0.02):
        return scale * jax.random.normal(k, shape, dtype=jnp.float32)

    keys = iter(jax.random.split(key, 64))
    params = {
        "patch_w": nrm(next(keys), (C * P * P, D)),   # conv-as-matmul (CLIP: bias=False)
        "cls_emb": nrm(next(keys), (D,)),
        "pos_emb": nrm(next(keys), (S, D)),           # row 0 = CLS position (HF order)
        "pre_ln_g": jnp.ones((D,), jnp.float32),
        "pre_ln_b": jnp.zeros((D,), jnp.float32),
        "proj_w1": nrm(next(keys), (D, llm_dim)),
        "proj_b1": jnp.zeros((llm_dim,), jnp.float32),
        "proj_w2": nrm(next(keys), (llm_dim, llm_dim)),
        "proj_b2": jnp.zeros((llm_dim,), jnp.float32),
        "layers": [],
    }
    for _ in range(n_layers):
        wq, wk, wv = (nrm(next(keys), (D, D)) for _ in range(3))
        params["layers"].append({
            "ln1_g": jnp.ones((D,), jnp.float32), "ln1_b": jnp.zeros((D,), jnp.float32),
            "wqkv": jnp.concatenate([wq, wk, wv], axis=1),     # fused [D, 3D]
            "bqkv": jnp.zeros((3 * D,), jnp.float32),
            "wo": nrm(next(keys), (D, D)), "bo": jnp.zeros((D,), jnp.float32),
            "ln2_g": jnp.ones((D,), jnp.float32), "ln2_b": jnp.zeros((D,), jnp.float32),
            "w1": nrm(next(keys), (D, mlp_dim)), "b1": jnp.zeros((mlp_dim,), jnp.float32),
            "w2": nrm(next(keys), (mlp_dim, D)), "b2": jnp.zeros((D,), jnp.float32),
        })
    config = dict(C=C, P=P, D=D, heads=heads, mlp_dim=mlp_dim, llm_dim=llm_dim)
    return params, config


# ------------------------------- forward pass ----------------------------------

def encoder_forward(params, config, images, *, single_buffer_weights=True):
    # layout: images are NCHW [B, C, H, W] as in PyTorch.
    B, C, H, W = images.shape
    P, D, heads, llm_dim = config["P"], config["D"], config["heads"], config["llm_dim"]
    hp, wp = H // P, W // P
    n_patch = hp * wp
    S = n_patch + 1

    # im2col for Conv2d(C, D, kernel=P, stride=P, bias=False): pure layout, stays in XLA
    x = images.reshape(B, C, hp, P, wp, P)
    patches = jnp.transpose(x, (0, 2, 4, 1, 3, 5)).reshape(B, n_patch, C * P * P)

    # patch embed + CLS(last) + pos-emb + pre-LN (fused kernel, grid over batch)
    h = embed_preln(patches, params, S, D,
                    single_buffer_weights=single_buffer_weights)    # [B, S, D] bf16

    # all used transformer layers fused in one kernel; LLaVA selects
    # hidden_states[-2] so the last layer's output is never needed.
    h = transformer_layers(h, params, heads)                        # [B, S, D] bf16

    # drop CLS (last row) + mm_projector Linear -> GELU -> Linear (column-tiled)
    return mm_projector(h, params, n_patch, llm_dim,
                        single_buffer_weights=single_buffer_weights,
                        out_dtype=images.dtype)                     # [B, n_patch, llm]


# ----------------------------------- main ---------------------------------------

if __name__ == "__main__":
    key = jax.random.PRNGKey(0)
    pkey, xkey = jax.random.split(key)
    params, config = init_params(pkey)

    # images: NCHW, batch=2, 3 channels, 16x16 spatial, patch=8 -> 4 patches/image
    images = jax.random.normal(xkey, (2, 3, 16, 16), dtype=jnp.float32)

    try:
        out = jax.block_until_ready(
            encoder_forward(params, config, images, single_buffer_weights=True))
    except Exception:
        # pl.Buffered(1) (single-buffered constant weights) not supported by this
        # JAX build -> fall back to default double-buffered weight BlockSpecs.
        out = jax.block_until_ready(
            encoder_forward(params, config, images, single_buffer_weights=False))

    assert out.shape == (2, 4, config["llm_dim"]), out.shape
    assert bool(jnp.all(jnp.isfinite(out)))
    print("KERNEL_OK")
</pallas_src>

<mosaic_0001>
module attributes {stable_mosaic.version = 11 : i64} {
  func.func @_embed_kernel(%arg0: i32, %arg1: memref<1x4x192xf32, #tpu.memory_space<vmem>>, %arg2: memref<192x32xbf16, #tpu.memory_space<vmem>>, %arg3: memref<1x32xf32, #tpu.memory_space<vmem>>, %arg4: memref<5x32xf32, #tpu.memory_space<vmem>>, %arg5: memref<1x32xf32, #tpu.memory_space<vmem>>, %arg6: memref<1x32xf32, #tpu.memory_space<vmem>>, %arg7: memref<1x5x32xbf16, #tpu.memory_space<vmem>>) attributes {dimension_semantics = [#tpu.dimension_semantics<parallel>], iteration_bounds = array<i64: 2>, scalar_prefetch = 0 : i64, scratch_operands = 0 : i64, tpu.core_type = #tpu.core_type<tc>, window_params = [{transform_indices = @transform_0, window_bounds = array<i64: 1, 4, 192>}, {pipeline_mode = #tpu.pipeline_mode<synchronous>, transform_indices = @transform_1, window_bounds = array<i64: 192, 32>}, {pipeline_mode = #tpu.pipeline_mode<synchronous>, transform_indices = @transform_2, window_bounds = array<i64: 1, 32>}, {pipeline_mode = #tpu.pipeline_mode<synchronous>, transform_indices = @transform_3, window_bounds = array<i64: 5, 32>}, {pipeline_mode = #tpu.pipeline_mode<synchronous>, transform_indices = @transform_4, window_bounds = array<i64: 1, 32>}, {pipeline_mode = #tpu.pipeline_mode<synchronous>, transform_indices = @transform_5, window_bounds = array<i64: 1, 32>}, {transform_indices = @transform_6, window_bounds = array<i64: 1, 5, 32>}]} {
    %c0 = arith.constant 0 : index
    %c0_0 = arith.constant 0 : index
    %c0_1 = arith.constant 0 : index
    %0 = vector.load %arg1[%c0, %c0_0, %c0_1] : memref<1x4x192xf32, #tpu.memory_space<vmem>>, vector<1x4x192xf32>
    %1 = vector.shape_cast %0 : vector<1x4x192xf32> to vector<4x192xf32>
    %2 = arith.truncf %1 : vector<4x192xf32> to vector<4x192xbf16>
    %c0_2 = arith.constant 0 : index
    %c0_3 = arith.constant 0 : index
    %3 = vector.load %arg2[%c0_2, %c0_3] : memref<192x32xbf16, #tpu.memory_space<vmem>>, vector<192x32xbf16>
    %cst = arith.constant dense<0.000000e+00> : vector<4x32xf32>
    %4 = tpu.matmul %2, %3, %cst {dimension_numbers = #tpu.dot_dimension_numbers<[1], [0], [0], [1], [0, 0, 1, 1], [], []>} : vector<4x192xbf16>, vector<192x32xbf16>, vector<4x32xf32> -> vector<4x32xf32>
    %c0_4 = arith.constant 0 : index
    %c0_5 = arith.constant 0 : index
    %5 = vector.load %arg5[%c0_4, %c0_5] : memref<1x32xf32, #tpu.memory_space<vmem>>, vector<1x32xf32>
    %c0_6 = arith.constant 0 : index
    %c0_7 = arith.constant 0 : index
    %6 = vector.load %arg6[%c0_6, %c0_7] : memref<1x32xf32, #tpu.memory_space<vmem>>, vector<1x32xf32>
    %c0_8 = arith.constant 0 : index
    %c0_9 = arith.constant 0 : index
    %7 = vector.load %arg4[%c0_8, %c0_9] : memref<5x32xf32, #tpu.memory_space<vmem>>, vector<4x32xf32>
    %8 = arith.addf %4, %7 : vector<4x32xf32>
    %cst_10 = arith.constant dense<0.000000e+00> : vector<4xf32>
    %9 = vector.multi_reduction <add>, %8, %cst_10 [1] : vector<4x32xf32> to vector<4xf32>
    %10 = vector.shape_cast %9 : vector<4xf32> to vector<4x1xf32>
    %cst_11 = arith.constant 3.200000e+01 : f32
    %11 = vector.broadcast %cst_11 : f32 to vector<4x1xf32>
    %12 = arith.divf %10, %11 : vector<4x1xf32>
    %13 = vector.broadcast %12 : vector<4x1xf32> to vector<4x32xf32>
    %14 = arith.subf %8, %13 : vector<4x32xf32>
    %15 = arith.mulf %14, %14 : vector<4x32xf32>
    %cst_12 = arith.constant dense<0.000000e+00> : vector<4xf32>
    %16 = vector.multi_reduction <add>, %15, %cst_12 [1] : vector<4x32xf32> to vector<4xf32>
    %17 = vector.shape_cast %16 : vector<4xf32> to vector<4x1xf32>
    %cst_13 = arith.constant 3.200000e+01 : f32
    %18 = vector.broadcast %cst_13 : f32 to vector<4x1xf32>
    %19 = arith.divf %17, %18 : vector<4x1xf32>
    %20 = vector.broadcast %12 : vector<4x1xf32> to vector<4x32xf32>
    %21 = arith.subf %8, %20 : vector<4x32xf32>
    %cst_14 = arith.constant 9.99999974E-6 : f32
    %22 = vector.broadcast %cst_14 : f32 to vector<4x1xf32>
    %23 = arith.addf %19, %22 : vector<4x1xf32>
    %24 = math.rsqrt %23 : vector<4x1xf32>
    %25 = vector.broadcast %24 : vector<4x1xf32> to vector<4x32xf32>
    %26 = arith.mulf %21, %25 : vector<4x32xf32>
    %27 = vector.broadcast %5 : vector<1x32xf32> to vector<4x32xf32>
    %28 = arith.mulf %26, %27 : vector<4x32xf32>
    %29 = vector.broadcast %6 : vector<1x32xf32> to vector<4x32xf32>
    %30 = arith.addf %28, %29 : vector<4x32xf32>
    %31 = arith.truncf %30 : vector<4x32xf32> to vector<4x32xbf16>
    %c0_15 = arith.constant 0 : index
    %c0_16 = arith.constant 0 : index
    %c0_17 = arith.constant 0 : index
    %32 = vector.load %arg7[%c0_15, %c0_16, %c0_17] : memref<1x5x32xbf16, #tpu.memory_space<vmem>>, vector<1x4x32xbf16>
    %33 = vector.shape_cast %32 : vector<1x4x32xbf16> to vector<4x32xbf16>
    %34 = vector.shape_cast %31 : vector<4x32xbf16> to vector<1x4x32xbf16>
    tpu.vector_store %arg7[%c0_15, %c0_16, %c0_17], %34 {strides = array<i32>} : memref<1x5x32xbf16, #tpu.memory_space<vmem>>, vector<1x4x32xbf16>,
    %c0_18 = arith.constant 0 : index
    %c0_19 = arith.constant 0 : index
    %35 = vector.load %arg3[%c0_18, %c0_19] : memref<1x32xf32, #tpu.memory_space<vmem>>, vector<1x32xf32>
    %c4 = arith.constant 4 : index
    %c0_20 = arith.constant 0 : index
    %36 = vector.load %arg4[%c4, %c0_20] : memref<5x32xf32, #tpu.memory_space<vmem>>, vector<1x32xf32>
    %37 = arith.addf %35, %36 : vector<1x32xf32>
    %cst_21 = arith.constant dense<0.000000e+00> : vector<1xf32>
    %38 = vector.multi_reduction <add>, %37, %cst_21 [1] : vector<1x32xf32> to vector<1xf32>
    %39 = vector.shape_cast %38 : vector<1xf32> to vector<1x1xf32>
    %cst_22 = arith.constant 3.200000e+01 : f32
    %40 = vector.broadcast %cst_22 : f32 to vector<1x1xf32>
    %41 = arith.divf %39, %40 : vector<1x1xf32>
    %42 = vector.broadcast %41 : vector<1x1xf32> to vector<1x32xf32>
    %43 = arith.subf %37, %42 : vector<1x32xf32>
    %44 = arith.mulf %43, %43 : vector<1x32xf32>
    %cst_23 = arith.constant dense<0.000000e+00> : vector<1xf32>
    %45 = vector.multi_reduction <add>, %44, %cst_23 [1] : vector<1x32xf32> to vector<1xf32>
    %46 = vector.shape_cast %45 : vector<1xf32> to vector<1x1xf32>
    %cst_24 = arith.constant 3.200000e+01 : f32
    %47 = vector.broadcast %cst_24 : f32 to vector<1x1xf32>
    %48 = arith.divf %46, %47 : vector<1x1xf32>
    %49 = vector.broadcast %41 : vector<1x1xf32> to vector<1x32xf32>
    %50 = arith.subf %37, %49 : vector<1x32xf32>
    %cst_25 = arith.constant 9.99999974E-6 : f32
    %51 = vector.broadcast %cst_25 : f32 to vector<1x1xf32>
    %52 = arith.addf %48, %51 : vector<1x1xf32>
    %53 = math.rsqrt %52 : vector<1x1xf32>
    %54 = vector.broadcast %53 : vector<1x1xf32> to vector<1x32xf32>
    %55 = arith.mulf %50, %54 : vector<1x32xf32>
    %56 = arith.mulf %55, %5 : vector<1x32xf32>
    %57 = arith.addf %56, %6 : vector<1x32xf32>
    %58 = arith.truncf %57 : vector<1x32xf32> to vector<1x32xbf16>
    %c0_26 = arith.constant 0 : index
    %c4_27 = arith.constant 4 : index
    %c0_28 = arith.constant 0 : index
    %59 = vector.load %arg7[%c0_26, %c4_27, %c0_28] : memref<1x5x32xbf16, #tpu.memory_space<vmem>>, vector<1x1x32xbf16>
    %60 = vector.shape_cast %59 : vector<1x1x32xbf16> to vector<1x32xbf16>
    %61 = vector.shape_cast %58 : vector<1x32xbf16> to vector<1x1x32xbf16>
    tpu.vector_store %arg7[%c0_26, %c4_27, %c0_28], %61 {strides = array<i32>} : memref<1x5x32xbf16, #tpu.memory_space<vmem>>, vector<1x1x32xbf16>,
    return
  }
  func.func @transform_0(%arg0: i32) -> (i32, i32, i32) {
    %c0_i32 = arith.constant 0 : i32
    %c0_i32_0 = arith.constant 0 : i32
    %c0_i32_1 = arith.constant 0 : i32
    return %arg0, %c0_i32, %c0_i32_0 : i32, i32, i32
  }
  func.func @transform_1(%arg0: i32) -> (i32, i32) {
    %c0_i32 = arith.constant 0 : i32
    %c0_i32_0 = arith.constant 0 : i32
    %c0_i32_1 = arith.constant 0 : i32
    return %c0_i32, %c0_i32_0 : i32, i32
  }
  func.func @transform_2(%arg0: i32) -> (i32, i32) {
    %c0_i32 = arith.constant 0 : i32
    %c0_i32_0 = arith.constant 0 : i32
    %c0_i32_1 = arith.constant 0 : i32
    return %c0_i32, %c0_i32_0 : i32, i32
  }
  func.func @transform_3(%arg0: i32) -> (i32, i32) {
    %c0_i32 = arith.constant 0 : i32
    %c0_i32_0 = arith.constant 0 : i32
    %c0_i32_1 = arith.constant 0 : i32
    return %c0_i32, %c0_i32_0 : i32, i32
  }
  func.func @transform_4(%arg0: i32) -> (i32, i32) {
    %c0_i32 = arith.constant 0 : i32
    %c0_i32_0 = arith.constant 0 : i32
    %c0_i32_1 = arith.constant 0 : i32
    return %c0_i32, %c0_i32_0 : i32, i32
  }
  func.func @transform_5(%arg0: i32) -> (i32, i32) {
    %c0_i32 = arith.constant 0 : i32
    %c0_i32_0 = arith.constant 0 : i32
    %c0_i32_1 = arith.constant 0 : i32
    return %c0_i32, %c0_i32_0 : i32, i32
  }
  func.func @transform_6(%arg0: i32) -> (i32, i32, i32) {
    %c0_i32 = arith.constant 0 : i32
    %c0_i32_0 = arith.constant 0 : i32
    %c0_i32_1 = arith.constant 0 : i32
    return %arg0, %c0_i32, %c0_i32_0 : i32, i32, i32
  }
}

module attributes {stable_mosaic.version = 11 : i64} {
  func.func @_embed_kernel(%arg0: i32, %arg1: memref<1x4x192xf32, #tpu.memory_space<vmem>>, %arg2: memref<192x32xbf16, #tpu.memory_space<vmem>>, %arg3: memref<1x32xf32, #tpu.memory_space<vmem>>, %arg4: memref<5x32xf32, #tpu.memory_space<vmem>>, %arg5: memref<1x32xf32, #tpu.memory_space<vmem>>, %arg6: memref<1x32xf32, #tpu.memory_space<vmem>>, %arg7: memref<1x5x32xbf16, #tpu.memory_space<vmem>>) attributes {dimension_semantics = [#tpu.dimension_semantics<parallel>], iteration_bounds = array<i64: 2>, scalar_prefetch = 0 : i64, scratch_operands = 0 : i64, tpu.core_type = #tpu.core_type<tc>, window_params = [{transform_indices = @transform_0, window_bounds = array<i64: 1, 4, 192>}, {pipeline_mode = #tpu.pipeline_mode<synchronous>, transform_indices = @transform_1, window_bounds = array<i64: 192, 32>}, {pipeline_mode = #tpu.pipeline_mode<synchronous>, transform_indices = @transform_2, window_bounds = array<i64: 1, 32>}, {pipeline_mode = #tpu.pipeline_mode<synchronous>, transform_indices = @transform_3, window_bounds = array<i64: 5, 32>}, {pipeline_mode = #tpu.pipeline_mode<synchronous>, transform_indices = @transform_4, window_bounds = array<i64: 1, 32>}, {pipeline_mode = #tpu.pipeline_mode<synchronous>, transform_indices = @transform_5, window_bounds = array<i64: 1, 32>}, {transform_indices = @transform_6, window_bounds = array<i64: 1, 5, 32>}]} {
    %c0 = arith.constant 0 : index
    %c0_0 = arith.constant 0 : index
    %c0_1 = arith.constant 0 : index
    %0 = vector.load %arg1[%c0, %c0_0, %c0_1] : memref<1x4x192xf32, #tpu.memory_space<vmem>>, vector<1x4x192xf32>
    %1 = vector.shape_cast %0 : vector<1x4x192xf32> to vector<4x192xf32>
    %2 = arith.truncf %1 : vector<4x192xf32> to vector<4x192xbf16>
    %c0_2 = arith.constant 0 : index
    %c0_3 = arith.constant 0 : index
    %3 = vector.load %arg2[%c0_2, %c0_3] : memref<192x32xbf16, #tpu.memory_space<vmem>>, vector<192x32xbf16>
    %cst = arith.constant dense<0.000000e+00> : vector<4x32xf32>
    %4 = tpu.matmul %2, %3, %cst {dimension_numbers = #tpu.dot_dimension_numbers<[1], [0], [0], [1], [0, 0, 1, 1], [], []>} : vector<4x192xbf16>, vector<192x32xbf16>, vector<4x32xf32> -> vector<4x32xf32>
    %c0_4 = arith.constant 0 : index
    %c0_5 = arith.constant 0 : index
    %5 = vector.load %arg5[%c0_4, %c0_5] : memref<1x32xf32, #tpu.memory_space<vmem>>, vector<1x32xf32>
    %c0_6 = arith.constant 0 : index
    %c0_7 = arith.constant 0 : index
    %6 = vector.load %arg6[%c0_6, %c0_7] : memref<1x32xf32, #tpu.memory_space<vmem>>, vector<1x32xf32>
    %c0_8 = arith.constant 0 : index
    %c0_9 = arith.constant 0 : index
    %7 = vector.load %arg4[%c0_8, %c0_9] : memref<5x32xf32, #tpu.memory_space<vmem>>, vector<4x32xf32>
    %8 = arith.addf %4, %7 : vector<4x32xf32>
    %cst_10 = arith.constant dense<0.000000e+00> : vector<4xf32>
    %9 = vector.multi_reduction <add>, %8, %cst_10 [1] : vector<4x32xf32> to vector<4xf32>
    %10 = vector.shape_cast %9 : vector<4xf32> to vector<4x1xf32>
    %cst_11 = arith.constant 3.200000e+01 : f32
    %11 = vector.broadcast %cst_11 : f32 to vector<4x1xf32>
    %12 = arith.divf %10, %11 : vector<4x1xf32>
    %13 = vector.broadcast %12 : vector<4x1xf32> to vector<4x32xf32>
    %14 = arith.subf %8, %13 : vector<4x32xf32>
    %15 = arith.mulf %14, %14 : vector<4x32xf32>
    %cst_12 = arith.constant dense<0.000000e+00> : vector<4xf32>
    %16 = vector.multi_reduction <add>, %15, %cst_12 [1] : vector<4x32xf32> to vector<4xf32>
    %17 = vector.shape_cast %16 : vector<4xf32> to vector<4x1xf32>
    %cst_13 = arith.constant 3.200000e+01 : f32
    %18 = vector.broadcast %cst_13 : f32 to vector<4x1xf32>
    %19 = arith.divf %17, %18 : vector<4x1xf32>
    %20 = vector.broadcast %12 : vector<4x1xf32> to vector<4x32xf32>
    %21 = arith.subf %8, %20 : vector<4x32xf32>
    %cst_14 = arith.constant 9.99999974E-6 : f32
    %22 = vector.broadcast %cst_14 : f32 to vector<4x1xf32>
    %23 = arith.addf %19, %22 : vector<4x1xf32>
    %24 = math.rsqrt %23 : vector<4x1xf32>
    %25 = vector.broadcast %24 : vector<4x1xf32> to vector<4x32xf32>
    %26 = arith.mulf %21, %25 : vector<4x32xf32>
    %27 = vector.broadcast %5 : vector<1x32xf32> to vector<4x32xf32>
    %28 = arith.mulf %26, %27 : vector<4x32xf32>
    %29 = vector.broadcast %6 : vector<1x32xf32> to vector<4x32xf32>
    %30 = arith.addf %28, %29 : vector<4x32xf32>
    %31 = arith.truncf %30 : vector<4x32xf32> to vector<4x32xbf16>
    %c0_15 = arith.constant 0 : index
    %c0_16 = arith.constant 0 : index
    %c0_17 = arith.constant 0 : index
    %32 = vector.load %arg7[%c0_15, %c0_16, %c0_17] : memref<1x5x32xbf16, #tpu.memory_space<vmem>>, vector<1x4x32xbf16>
    %33 = vector.shape_cast %32 : vector<1x4x32xbf16> to vector<4x32xbf16>
    %34 = vector.shape_cast %31 : vector<4x32xbf16> to vector<1x4x32xbf16>
    tpu.vector_store %arg7[%c0_15, %c0_16, %c0_17], %34 {strides = array<i32>} : memref<1x5x32xbf16, #tpu.memory_space<vmem>>, vector<1x4x32xbf16>,
    %c0_18 = arith.constant 0 : index
    %c0_19 = arith.constant 0 : index
    %35 = vector.load %arg3[%c0_18, %c0_19] : memref<1x32xf32, #tpu.memory_space<vmem>>, vector<1x32xf32>
    %c4 = arith.constant 4 : index
    %c0_20 = arith.constant 0 : index
    %36 = vector.load %arg4[%c4, %c0_20] : memref<5x32xf32, #tpu.memory_space<vmem>>, vector<1x32xf32>
    %37 = arith.addf %35, %36 : vector<1x32xf32>
    %cst_21 = arith.constant dense<0.000000e+00> : vector<1xf32>
    %38 = vector.multi_reduction <add>, %37, %cst_21 [1] : vector<1x32xf32> to vector<1xf32>
    %39 = vector.shape_cast %38 : vector<1xf32> to vector<1x1xf32>
    %cst_22 = arith.constant 3.200000e+01 : f32
    %40 = vector.broadcast %cst_22 : f32 to vector<1x1xf32>
    %41 = arith.divf %39, %40 : vector<1x1xf32>
    %42 = vector.broadcast %41 : vector<1x1xf32> to vector<1x32xf32>
    %43 = arith.subf %37, %42 : vector<1x32xf32>
    %44 = arith.mulf %43, %43 : vector<1x32xf32>
    %cst_23 = arith.constant dense<0.000000e+00> : vector<1xf32>
    %45 = vector.multi_reduction <add>, %44, %cst_23 [1] : vector<1x32xf32> to vector<1xf32>
    %46 = vector.shape_cast %45 : vector<1xf32> to vector<1x1xf32>
    %cst_24 = arith.constant 3.200000e+01 : f32
    %47 = vector.broadcast %cst_24 : f32 to vector<1x1xf32>
    %48 = arith.divf %46, %47 : vector<1x1xf32>
    %49 = vector.broadcast %41 : vector<1x1xf32> to vector<1x32xf32>
    %50 = arith.subf %37, %49 : vector<1x32xf32>
    %cst_25 = arith.constant 9.99999974E-6 : f32
    %51 = vector.broadcast %cst_25 : f32 to vector<1x1xf32>
    %52 = arith.addf %48, %51 : vector<1x1xf32>
    %53 = math.rsqrt %52 : vector<1x1xf32>
    %54 = vector.broadcast %53 : vector<1x1xf32> to vector<1x32xf32>
    %55 = arith.mulf %50, %54 : vector<1x32xf32>
    %56 = arith.mulf %55, %5 : vector<1x32xf32>
    %57 = arith.addf %56, %6 : vector<1x32xf32>
    %58 = arith.truncf %57 : vector<1x32xf32> to vector<1x32xbf16>
    %c0_26 = arith.constant 0 : index
    %c4_27 = arith.constant 4 : index
    %c0_28 = arith.constant 0 : index
    %59 = vector.load %arg7[%c0_26, %c4_27, %c0_28] : memref<1x5x32xbf16, #tpu.memory_space<vmem>>, vector<1x1x32xbf16>
    %60 = vector.shape_cast %59 : vector<1x1x32xbf16> to vector<1x32xbf16>
    %61 = vector.shape_cast %58 : vector<1x32xbf16> to vector<1x1x32xbf16>
    tpu.vector_store %arg7[%c0_26, %c4_27, %c0_28], %61 {strides = array<i32>} : memref<1x5x32xbf16, #tpu.memory_space<vmem>>, vector<1x1x32xbf16>,
    return
  }
  func.func @transform_0(%arg0: i32) -> (i32, i32, i32) {
    %c0_i32 = arith.constant 0 : i32
    %c0_i32_0 = arith.constant 0 : i32
    %c0_i32_1 = arith.constant 0 : i32
    return %arg0, %c0_i32, %c0_i32_0 : i32, i32, i32
  }
  func.func @transform_1(%arg0: i32) -> (i32, i32) {
    %c0_i32 = arith.constant 0 : i32
    %c0_i32_0 = arith.constant 0 : i32
    %c0_i32_1 = arith.constant 0 : i32
    return %c0_i32, %c0_i32_0 : i32, i32
  }
  func.func @transform_2(%arg0: i32) -> (i32, i32) {
    %c0_i32 = arith.constant 0 : i32
    %c0_i32_0 = arith.constant 0 : i32
    %c0_i32_1 = arith.constant 0 : i32
    return %c0_i32, %c0_i32_0 : i32, i32
  }
  func.func @transform_3(%arg0: i32) -> (i32, i32) {
    %c0_i32 = arith.constant 0 : i32
    %c0_i32_0 = arith.constant 0 : i32
    %c0_i32_1 = arith.constant 0 : i32
    return %c0_i32, %c0_i32_0 : i32, i32
  }
  func.func @transform_4(%arg0: i32) -> (i32, i32) {
    %c0_i32 = arith.constant 0 : i32
    %c0_i32_0 = arith.constant 0 : i32
    %c0_i32_1 = arith.constant 0 : i32
    return %c0_i32, %c0_i32_0 : i32, i32
  }
  func.func @transform_5(%arg0: i32) -> (i32, i32) {
    %c0_i32 = arith.constant 0 : i32
    %c0_i32_0 = arith.constant 0 : i32
    %c0_i32_1 = arith.constant 0 : i32
    return %c0_i32, %c0_i32_0 : i32, i32
  }
  func.func @transform_6(%arg0: i32) -> (i32, i32, i32) {
    %c0_i32 = arith.constant 0 : i32
    %c0_i32_0 = arith.constant 0 : i32
    %c0_i32_1 = arith.constant 0 : i32
    return %arg0, %c0_i32, %c0_i32_0 : i32, i32, i32
  }
}

</mosaic_0001>

<bundles_post_ra>
// kernel: tpu_custom_call.1
= control target key start
LH: loop header
LB: loop body
LE: loop exit
PB: predicated region body
PF: predicated region fallthrough
CT: control target
= control target key end

     0   :  { %s612_s21 = smov 0   ;;  %s693_s0 = inlined_call_operand.vmem [shape: f32[2,4,192], index: 0, kind: input, shape index: {}]   ;;  %s694_s1 = inlined_call_operand.vmem [shape: bf16[192,32], index: 1, kind: input, shape index: {}]   ;;  %s695_s2 = inlined_call_operand.vmem [shape: f32[1,32], index: 2, kind: input, shape index: {}]   ;;  %s696_s3 = inlined_call_operand.vmem [shape: f32[5,32], index: 3, kind: input, shape index: {}]   ;;  %s697_s4 = inlined_call_operand.vmem [shape: f32[1,32], index: 4, kind: input, shape index: {}]   ;;  %s698_s5 = inlined_call_operand.vmem [shape: f32[1,32], index: 5, kind: input, shape index: {}]   ;;  %s699_s6 = inlined_call_operand.vmem [shape: bf16[2,5,32], index: 6, kind: output, shape index: {}]  }
   0x1 LB: > { %s516_s22 = sadd.s32 4294967295, %s574_s21   ;;  %p520_p0 = scmp.ge.s32.totalorder %s574_s21, 1  ;;  %s574_s21 = sphi %s612_s21, %s16_s21  }
   0x2   : > { %p212_p1 = scmp.lt.s32.totalorder %s574_s21, 3 }
   0x4   : > { %p213_p2 = pnand %p520_p0, %p212_p1 }
   0x5   : > { %p241_p3 = scmp.lt.s32.totalorder (!%p213_p2), %s516_s22, 1 }
   0x6   : > { %216 = sbr.rel (%p213_p2) target bundleno = 566 (0x236), region = 44 }
   0xb   : > { %v551_v0 = vld [vmem:[%s694_s1 + $0x38] sm:$0xff]   ;;  %v576_v1 = vmov 0   ;;  %v552_v2 = vld [vmem:[%s694_s1 + $0x30] sm:$0xff]   ;;  %s701_s22 = smov (!%p241_p3, %s516_s22), 1  ;;  %v553_v3 = vld [vmem:[%s694_s1 + $0x28] sm:$0xff]   ;;  %vm435_vm0 = vcmask 253952   ;;  %v416_v54 = vlaneseq }
   0xc   : > { %360 = vmatprep.subr.bf16.mxu0 %v576_v1  ;;  %s540_s29 = sshll.u32 %s701_s22, 3  ;;  %v554_v4 = vld [vmem:[%s694_s1 + $0x20] sm:$0xff]   ;;  %v555_v9 = vld [vmem:[%s694_s1 + $0x18] sm:$0xff]   ;;  %vm356_vm1 = vcmask 523264   ;;  %v556_v13 = vld [vmem:[%s694_s1 + $0x10] sm:$0xff]   ;;  %vm400_vm2 = vcmask 257024  }
   0xd   : > { %361 = vmatpush1.bf16.msra.mxu0 %v551_v0  ;;  %s245_s8 = scalar_lea.vmem %s693_s0, %s540_s29  ;;  %v432_v6 = vld [vmem:[%s695_s2] sm:$0x1]  ;;  %v433_v8 = vld [vmem:[%s696_s3 + $0x4] sm:$0x1]  ;;  %v557_v14 = vld [vmem:[%s694_s1 + $0x8] sm:$0xff]   ;;  %s523_s13 = sshll.u32 %s701_s22, 2 }
   0xe   : > { %362 = vmatprep.subr.bf16.mxu0 %v576_v1  ;;  %v251_v5 = vld [vmem:[%s245_s8] sm:$0xff]  ;;  %v434_v10 = vadd.f32 %v433_v8, %v432_v6  ;;  %v559_v16 = vld [vmem:[%s694_s1 + $0x58] sm:$0xff]   ;;  %v560_v17 = vld [vmem:[%s694_s1 + $0x50] sm:$0xff]   ;;  %s684_s18 = scalar_lea.vmem %s699_s6, %s523_s13  ;;  %vm457_vm3 = vcmask 256002   ;;  %vm458_vm4 = vsmask.f32 2304 }
   0xf   : > { %v253_v7 = vcombine.high %v251_v5, %v251_v5  ;;  %v558_v15 = vld [vmem:[%s694_s1] sm:$0xff]   ;;  %v561_v18 = vld [vmem:[%s694_s1 + $0x48] sm:$0xff]   ;;  %v255_v20 = vpack.c.bf16 %v251_v5, %v251_v5  ;;  %vm459_vm5 = vmand %vm457_vm3, %vm458_vm4  ;;  %v417_v55 = vshrl.u32 %v416_v54, 7  ;;  %vm430_vm6 = vcmask 254976  }
  0x10   : > { %v436_v12 = vsel %vm435_vm0, %v434_v10, 0.0  ;;  %v562_v19 = vld [vmem:[%s694_s1 + $0x40] sm:$0xff]  }
  0x11   : > { %363 = vmatpush1.bf16.msra.mxu0 %v552_v2  ;;  %v256_v11 = vpack.c.bf16 %v253_v7, %v253_v7  ;;  %437 = vadd.xlane.f32.xlu0 %v436_v12  ;;  %v283_v26 = vld [vmem:[%s696_s3] sm:$0xf]  ;;  %v418_v56 = vsub.s32 0, %v417_v55 }
  0x12   : > { %364 = vmatprep.subr.bf16.mxu0 %v576_v1  ;;  %v281_v37 = vld [vmem:[%s697_s4] sm:$0x1]  ;;  %v460_v43 = vld [vmem:[%s684_s18] sm:$0x4] }
  0x13   : > { %536 = vmatprep.mubr.msk.bf16.mxu0 %vm356_vm1, %v256_v11  ;;  %v282_v39 = vld [vmem:[%s698_s5] sm:$0x1]  ;;  %v419_v57 = vrot.slane %v281_v37, %v418_v56 }
  0x14   : > { %v426_v59 = vrot.slane %v282_v39, %v418_v56 }
  0x15   : > { %365 = vmatpush1.bf16.msra.mxu0 %v553_v3 }
  0x16   : > { %366 = vmatprep.subr.bf16.mxu0 %v576_v1 }
  0x19   : > { %367 = vmatpush1.bf16.msra.mxu0 %v554_v4 }
  0x1a   : > { %368 = vmatprep.subr.bf16.mxu0 %v576_v1 }
  0x1d   : > { %369 = vmatpush1.bf16.msra.mxu0 %v555_v9 }
  0x1e   : > { %370 = vmatprep.subr.bf16.mxu0 %v576_v1 }
  0x21   : > { %371 = vmatpush1.bf16.msra.mxu0 %v556_v13 }
  0x22   : > { %372 = vmatprep.subr.bf16.mxu0 %v576_v1 }
  0x25   : > { %373 = vmatpush1.bf16.msra.mxu0 %v557_v14 }
  0x26   : > { %374 = vmatprep.subr.bf16.mxu0 %v576_v1 }
  0x29   : > { %375 = vmatpush1.bf16.msra.mxu0 %v558_v15 }
  0x2a   : > { %384 = vmatprep.subr.bf16.mxu0 %v576_v1 }
  0x2d   : > { %385 = vmatpush2.bf16.msra.mxu0 %v559_v16 }
  0x2e   : > { %386 = vmatprep.subr.bf16.mxu0 %v576_v1 }
  0x31   : > { %387 = vmatpush2.bf16.msra.mxu0 %v560_v17 }
  0x32   : > { %388 = vmatprep.subr.bf16.mxu0 %v576_v1 }
  0x35   : > { %389 = vmatpush2.bf16.msra.mxu0 %v561_v18 }
  0x36   : > { %390 = vmatprep.subr.bf16.mxu0 %v576_v1 }
  0x39   : > { %391 = vmatpush2.bf16.msra.mxu0 %v562_v19 }
  0x3c   : > { %393 = vmatmul.mubr.bf16.vlgmr.msra.gmra.mxu0 %v255_v20 }
  0x9a   : > { %v438_v21 = vpop.xlane.xlu0 %437 }
  0x9b   : > { %v439_v22 = vmul.f32 0.03125, %v438_v21 }
  0x9d   : > { %v440_v23 = vsub.f32 %v434_v10, %v439_v22 }
  0x9f   : > { %v441_v24 = vmul.f32 %v440_v23, %v440_v23 }
  0xa1   : > { %v442_v25 = vsel %vm435_vm0, %v441_v24, 0.0 }
  0xa2   : > { %443 = vadd.xlane.f32.xlu1 %v442_v25 }
  0xfc   : > { %v394_v27 = vpop.f32.mrf.mxu0 }
  0xfd   : > { %v395_v28 = vadd.f32 %v394_v27, %v283_v26 }
  0xfe   : > { %v396_v29 = vpop.f32.mrf.mxu0 }
  0xff   : > { %v401_v30 = vsel %vm400_vm2, %v395_v28, 0.0 }
 0x100   : > { %v397_v31 = vpop.f32.mrf.mxu0  ;;  %402 = vadd.xlane.f32.xlu0 %v401_v30 }
 0x102   : > { %v398_v32 = vpop.f32.mrf.mxu0 }
 0x12b   : > { %v444_v33 = vpop.xlane.xlu1 %443 }
 0x12c   : > { %v445_v34 = vmul.f32 0.03125, %v444_v33 }
 0x12e   : > { %v446_v35 = vadd.f32 1e-05, %v445_v34 }
 0x130   : > { %564 = vrsqrt.f32 %v446_v35 }
 0x13d   : > { %v565_v36 = vpop.eup %564 }
 0x13e   : > { %v448_v38 = vmul.f32 %v565_v36, %v440_v23 }
 0x140   : > { %v449_v40 = vmul.f32 %v448_v38, %v281_v37 }
 0x142   : > { %v450_v41 = vadd.f32 %v449_v40, %v282_v39 }
 0x144   : > { %v541_v42 = vpack.c.bf16 %v450_v41, %v450_v41 }
 0x146   : > { %v455_v44 = vrot.slane %v541_v42, 6 }
 0x148   : > { %v461_v45 = vsel %vm459_vm5, %v455_v44, %v460_v43 }
 0x149   : > { %462 = vst [vmem:[%s684_s18] sm:$0x4] %v461_v45 }
 0x189   : > { %v403_v46 = vpop.xlane.xlu0 %402 }
 0x18a   : > { %v405_v47 = vmul.f32 0.03125, %v403_v46 }
 0x18c   : > { %v406_v48 = vsub.f32 %v395_v28, %v405_v47 }
 0x18e   : > { %v407_v49 = vmul.f32 %v406_v48, %v406_v48 }
 0x190   : > { %v408_v50 = vsel %vm400_vm2, %v407_v49, 0.0 }
 0x191   : > { %409 = vadd.xlane.f32.xlu1 %v408_v50 }
 0x21a   : > { %v410_v51 = vpop.xlane.xlu1 %409 }
 0x21b   : > { %v411_v52 = vmul.f32 0.03125, %v410_v51 }
 0x21d   : > { %v412_v53 = vadd.f32 1e-05, %v411_v52 }
 0x21f   : > { %566 = vrsqrt.f32 %v412_v53 }
 0x22c   : > { %v567_v58 = vpop.eup %566 }
 0x22d   : > { %v414_v60 = vmul.f32 %v567_v58, %v406_v48 }
 0x22f   : > { %v421_v61 = vmul.f32 %v419_v57, %v414_v60 }
 0x231   : > { %v428_v62 = vadd.f32 %v426_v59, %v421_v61 }
 0x233   : > { %v429_v63 = vpack.c.bf16 %v428_v62, %v428_v62 }
 0x235   : > { %431 = vst.msk [vmem:[%s684_s18] sm:$0x3] %vm430_vm6, %v429_v63 }
 0x236 PF: > { %s16_s21 = sadd.s32 1, %s574_s21  }
 0x237   : > { %p13_p4 = scmp.ge.s32.totalorder %s16_s21, 4  }
 0x239   :  { %15 = sbr.rel (!%p13_p4) target bundleno = 1 (0x1), region = 74 }

// kernel: tpu_custom_call.1
= control target key start
LH: loop header
LB: loop body
LE: loop exit
PB: predicated region body
PF: predicated region fallthrough
CT: control target
= control target key end

     0   :  { %s612_s21 = smov 0   ;;  %s693_s0 = inlined_call_operand.vmem [shape: f32[2,4,192], index: 0, kind: input, shape index: {}]   ;;  %s694_s1 = inlined_call_operand.vmem [shape: bf16[192,32], index: 1, kind: input, shape index: {}]   ;;  %s695_s2 = inlined_call_operand.vmem [shape: f32[1,32], index: 2, kind: input, shape index: {}]   ;;  %s696_s3 = inlined_call_operand.vmem [shape: f32[5,32], index: 3, kind: input, shape index: {}]   ;;  %s697_s4 = inlined_call_operand.vmem [shape: f32[1,32], index: 4, kind: input, shape index: {}]   ;;  %s698_s5 = inlined_call_operand.vmem [shape: f32[1,32], index: 5, kind: input, shape index: {}]   ;;  %s699_s6 = inlined_call_operand.vmem [shape: bf16[2,5,32], index: 6, kind: output, shape index: {}]  }
   0x1 LB: > { %s516_s22 = sadd.s32 4294967295, %s574_s21   ;;  %p520_p0 = scmp.ge.s32.totalorder %s574_s21, 1  ;;  %s574_s21 = sphi %s612_s21, %s16_s21  }
   0x2   : > { %p212_p1 = scmp.lt.s32.totalorder %s574_s21, 3 }
   0x4   : > { %p213_p2 = pnand %p520_p0, %p212_p1 }
   0x5   : > { %p241_p3 = scmp.lt.s32.totalorder (!%p213_p2), %s516_s22, 1 }
   0x6   : > { %216 = sbr.rel (%p213_p2) target bundleno = 566 (0x236), region = 44 }
   0xb   : > { %v551_v0 = vld [vmem:[%s694_s1 + $0x38] sm:$0xff]   ;;  %v576_v1 = vmov 0   ;;  %v552_v2 = vld [vmem:[%s694_s1 + $0x30] sm:$0xff]   ;;  %s701_s22 = smov (!%p241_p3, %s516_s22), 1  ;;  %v553_v3 = vld [vmem:[%s694_s1 + $0x28] sm:$0xff]   ;;  %vm435_vm0 = vcmask 253952   ;;  %v416_v54 = vlaneseq }
   0xc   : > { %360 = vmatprep.subr.bf16.mxu0 %v576_v1  ;;  %s540_s29 = sshll.u32 %s701_s22, 3  ;;  %v554_v4 = vld [vmem:[%s694_s1 + $0x20] sm:$0xff]   ;;  %v555_v9 = vld [vmem:[%s694_s1 + $0x18] sm:$0xff]   ;;  %vm356_vm1 = vcmask 523264   ;;  %v556_v13 = vld [vmem:[%s694_s1 + $0x10] sm:$0xff]   ;;  %vm400_vm2 = vcmask 257024  }
   0xd   : > { %361 = vmatpush1.bf16.msra.mxu0 %v551_v0  ;;  %s245_s8 = scalar_lea.vmem %s693_s0, %s540_s29  ;;  %v432_v6 = vld [vmem:[%s695_s2] sm:$0x1]  ;;  %v433_v8 = vld [vmem:[%s696_s3 + $0x4] sm:$0x1]  ;;  %v557_v14 = vld [vmem:[%s694_s1 + $0x8] sm:$0xff]   ;;  %s523_s13 = sshll.u32 %s701_s22, 2 }
   0xe   : > { %362 = vmatprep.subr.bf16.mxu0 %v576_v1  ;;  %v251_v5 = vld [vmem:[%s245_s8] sm:$0xff]  ;;  %v434_v10 = vadd.f32 %v433_v8, %v432_v6  ;;  %v559_v16 = vld [vmem:[%s694_s1 + $0x58] sm:$0xff]   ;;  %v560_v17 = vld [vmem:[%s694_s1 + $0x50] sm:$0xff]   ;;  %s684_s18 = scalar_lea.vmem %s699_s6, %s523_s13  ;;  %vm457_vm3 = vcmask 256002   ;;  %vm458_vm4 = vsmask.f32 2304 }
   0xf   : > { %v253_v7 = vcombine.high %v251_v5, %v251_v5  ;;  %v558_v15 = vld [vmem:[%s694_s1] sm:$0xff]   ;;  %v561_v18 = vld [vmem:[%s694_s1 + $0x48] sm:$0xff]   ;;  %v255_v20 = vpack.c.bf16 %v251_v5, %v251_v5  ;;  %vm459_vm5 = vmand %vm457_vm3, %vm458_vm4  ;;  %v417_v55 = vshrl.u32 %v416_v54, 7  ;;  %vm430_vm6 = vcmask 254976  }
  0x10   : > { %v436_v12 = vsel %vm435_vm0, %v434_v10, 0.0  ;;  %v562_v19 = vld [vmem:[%s694_s1 + $0x40] sm:$0xff]  }
  0x11   : > { %363 = vmatpush1.bf16.msra.mxu0 %v552_v2  ;;  %v256_v11 = vpack.c.bf16 %v253_v7, %v253_v7  ;;  %437 = vadd.xlane.f32.xlu0 %v436_v12  ;;  %v283_v26 = vld [vmem:[%s696_s3] sm:$0xf]  ;;  %v418_v56 = vsub.s32 0, %v417_v55 }
  0x12   : > { %364 = vmatprep.subr.bf16.mxu0 %v576_v1  ;;  %v281_v37 = vld [vmem:[%s697_s4] sm:$0x1]  ;;  %v460_v43 = vld [vmem:[%s684_s18] sm:$0x4] }
  0x13   : > { %536 = vmatprep.mubr.msk.bf16.mxu0 %vm356_vm1, %v256_v11  ;;  %v282_v39 = vld [vmem:[%s698_s5] sm:$0x1]  ;;  %v419_v57 = vrot.slane %v281_v37, %v418_v56 }
  0x14   : > { %v426_v59 = vrot.slane %v282_v39, %v418_v56 }
  0x15   : > { %365 = vmatpush1.bf16.msra.mxu0 %v553_v3 }
  0x16   : > { %366 = vmatprep.subr.bf16.mxu0 %v576_v1 }
  0x19   : > { %367 = vmatpush1.bf16.msra.mxu0 %v554_v4 }
  0x1a   : > { %368 = vmatprep.subr.bf16.mxu0 %v576_v1 }
  0x1d   : > { %369 = vmatpush1.bf16.msra.mxu0 %v555_v9 }
  0x1e   : > { %370 = vmatprep.subr.bf16.mxu0 %v576_v1 }
  0x21   : > { %371 = vmatpush1.bf16.msra.mxu0 %v556_v13 }
  0x22   : > { %372 = vmatprep.subr.bf16.mxu0 %v576_v1 }
  0x25   : > { %373 = vmatpush1.bf16.msra.mxu0 %v557_v14 }
  0x26   : > { %374 = vmatprep.subr.bf16.mxu0 %v576_v1 }
  0x29   : > { %375 = vmatpush1.bf16.msra.mxu0 %v558_v15 }
  0x2a   : > { %384 = vmatprep.subr.bf16.mxu0 %v576_v1 }
  0x2d   : > { %385 = vmatpush2.bf16.msra.mxu0 %v559_v16 }
  0x2e   : > { %386 = vmatprep.subr.bf16.mxu0 %v576_v1 }
  0x31   : > { %387 = vmatpush2.bf16.msra.mxu0 %v560_v17 }
  0x32   : > { %388 = vmatprep.subr.bf16.mxu0 %v576_v1 }
  0x35   : > { %389 = vmatpush2.bf16.msra.mxu0 %v561_v18 }
  0x36   : > { %390 = vmatprep.subr.bf16.mxu0 %v576_v1 }
  0x39   : > { %391 = vmatpush2.bf16.msra.mxu0 %v562_v19 }
  0x3c   : > { %393 = vmatmul.mubr.bf16.vlgmr.msra.gmra.mxu0 %v255_v20 }
  0x9a   : > { %v438_v21 = vpop.xlane.xlu0 %437 }
  0x9b   : > { %v439_v22 = vmul.f32 0.03125, %v438_v21 }
  0x9d   : > { %v440_v23 = vsub.f32 %v434_v10, %v439_v22 }
  0x9f   : > { %v441_v24 = vmul.f32 %v440_v23, %v440_v23 }
  0xa1   : > { %v442_v25 = vsel %vm435_vm0, %v441_v24, 0.0 }
  0xa2   : > { %443 = vadd.xlane.f32.xlu1 %v442_v25 }
  0xfc   : > { %v394_v27 = vpop.f32.mrf.mxu0 }
  0xfd   : > { %v395_v28 = vadd.f32 %v394_v27, %v283_v26 }
  0xfe   : > { %v396_v29 = vpop.f32.mrf.mxu0 }
  0xff   : > { %v401_v30 = vsel %vm400_vm2, %v395_v28, 0.0 }
 0x100   : > { %v397_v31 = vpop.f32.mrf.mxu0  ;;  %402 = vadd.xlane.f32.xlu0 %v401_v30 }
 0x102   : > { %v398_v32 = vpop.f32.mrf.mxu0 }
 0x12b   : > { %v444_v33 = vpop.xlane.xlu1 %443 }
 0x12c   : > { %v445_v34 = vmul.f32 0.03125, %v444_v33 }
 0x12e   : > { %v446_v35 = vadd.f32 1e-05, %v445_v34 }
 0x130   : > { %564 = vrsqrt.f32 %v446_v35 }
 0x13d   : > { %v565_v36 = vpop.eup %564 }
 0x13e   : > { %v448_v38 = vmul.f32 %v565_v36, %v440_v23 }
 0x140   : > { %v449_v40 = vmul.f32 %v448_v38, %v281_v37 }
 0x142   : > { %v450_v41 = vadd.f32 %v449_v40, %v282_v39 }
 0x144   : > { %v541_v42 = vpack.c.bf16 %v450_v41, %v450_v41 }
 0x146   : > { %v455_v44 = vrot.slane %v541_v42, 6 }
 0x148   : > { %v461_v45 = vsel %vm459_vm5, %v455_v44, %v460_v43 }
 0x149   : > { %462 = vst [vmem:[%s684_s18] sm:$0x4] %v461_v45 }
 0x189   : > { %v403_v46 = vpop.xlane.xlu0 %402 }
 0x18a   : > { %v405_v47 = vmul.f32 0.03125, %v403_v46 }
 0x18c   : > { %v406_v48 = vsub.f32 %v395_v28, %v405_v47 }
 0x18e   : > { %v407_v49 = vmul.f32 %v406_v48, %v406_v48 }
 0x190   : > { %v408_v50 = vsel %vm400_vm2, %v407_v49, 0.0 }
 0x191   : > { %409 = vadd.xlane.f32.xlu1 %v408_v50 }
 0x21a   : > { %v410_v51 = vpop.xlane.xlu1 %409 }
 0x21b   : > { %v411_v52 = vmul.f32 0.03125, %v410_v51 }
 0x21d   : > { %v412_v53 = vadd.f32 1e-05, %v411_v52 }
 0x21f   : > { %566 = vrsqrt.f32 %v412_v53 }
 0x22c   : > { %v567_v58 = vpop.eup %566 }
 0x22d   : > { %v414_v60 = vmul.f32 %v567_v58, %v406_v48 }
 0x22f   : > { %v421_v61 = vmul.f32 %v419_v57, %v414_v60 }
 0x231   : > { %v428_v62 = vadd.f32 %v426_v59, %v421_v61 }
 0x233   : > { %v429_v63 = vpack.c.bf16 %v428_v62, %v428_v62 }
 0x235   : > { %431 = vst.msk [vmem:[%s684_s18] sm:$0x3] %vm430_vm6, %v429_v63 }
 0x236 PF: > { %s16_s21 = sadd.s32 1, %s574_s21  }
 0x237   : > { %p13_p4 = scmp.ge.s32.totalorder %s16_s21, 4  }
 0x239   :  { %15 = sbr.rel (!%p13_p4) target bundleno = 1 (0x1), region = 74 }

</bundles_post_ra>
